<compile_context>
chip_gen: v5e
topology: v5e:2x2
jax: 0.10.0
libtpu: 0.0.40
codegen_flags: <defaults>
</compile_context>

<pallas_src>
import functools

import jax
import jax.numpy as jnp
import numpy as np
from jax import lax
from jax.experimental import pallas as pl
from jax.experimental.pallas import tpu as pltpu

LANE = 128
# Conservative budget for keeping all (padded, bf16) weights resident in VMEM.
# TODO(synk): add K/N tiling with an f32 VMEM accumulator (P3 pattern) for
# layers whose padded weights exceed this budget (v7x only has 64 MiB VMEM).
_VMEM_WEIGHT_BUDGET = 16 << 20


def _round_up(n, m):
    return ((n + m - 1) // m) * m


def _mlp_fused_kernel(*refs, n_layers, d_out, log_softmax):
    """refs = (x, w0, b0, w1, b1, ..., w_{L-1}, b_{L-1}, out)."""
    x_ref = refs[0]
    o_ref = refs[1 + 2 * n_layers]

    h = x_ref[...]                                       # bf16 (tb, d0_p)
    for li in range(n_layers):
        w = refs[1 + 2 * li][...]                        # bf16 (din_p, dout_p)
        b = refs[2 + 2 * li][...]                        # f32  (1, dout_p)
        y = jnp.dot(h, w, preferred_element_type=jnp.float32) + b
        if li < n_layers - 1:
            # ReLU in f32, cast back to bf16 for the next MXU pass.
            h = jnp.maximum(y, 0.0).astype(jnp.bfloat16)
        else:
            h = y                                        # final logits, f32

    if log_softmax:
        # Row-wise log_softmax over the REAL feature columns only: padded
        # columns are pushed to a huge negative so exp() underflows to 0.
        col = lax.broadcasted_iota(jnp.int32, h.shape, 1)
        valid = col < d_out
        h = jnp.where(valid, h, -1e30)
        m = jnp.max(h, axis=1, keepdims=True)
        s = jnp.sum(jnp.where(valid, jnp.exp(h - m), 0.0), axis=1, keepdims=True)
        h = h - m - jnp.log(s)

    o_ref[...] = h.astype(o_ref.dtype)


def mlp_forward(x, padded_params, dims, *, log_softmax, tb=128):
    """Run the fused MLP.  x: (B, dims[0]) f32; padded_params: [(w bf16, b f32)]."""
    B, d_in = x.shape
    assert d_in == dims[0]
    n_layers = len(padded_params)
    d_in_p = padded_params[0][0].shape[0]
    d_out_p = padded_params[-1][0].shape[1]
    B_p = _round_up(max(B, 1), tb)

    # Pad batch and input features with zeros (inert through zero-padded
    # Linear weights / ReLU); cast activations to bf16 for the MXU / DMA.
    x_p = jnp.zeros((B_p, d_in_p), jnp.bfloat16)
    x_p = x_p.at[:B, :d_in].set(x.astype(jnp.bfloat16))

    kernel = functools.partial(
        _mlp_fused_kernel, n_layers=n_layers, d_out=dims[-1],
        log_softmax=log_softmax)

    in_specs = [pl.BlockSpec((tb, d_in_p), lambda i: (i, 0))]   # x: tiled on batch
    operands = [x_p]
    total_w_bytes = 0
    for (w_p, b_p) in padded_params:
        din_p, dout_p = w_p.shape
        total_w_bytes += w_p.size * 2 + b_p.size * 4
        in_specs.append(pl.BlockSpec((din_p, dout_p), lambda i: (0, 0)))  # full weight
        in_specs.append(pl.BlockSpec((1, dout_p), lambda i: (0, 0)))      # bias row
        operands.append(w_p)
        operands.append(b_p)
    assert total_w_bytes < _VMEM_WEIGHT_BUDGET, (
        "padded weights too large for VMEM-resident fusion; needs K/N tiling")

    out = pl.pallas_call(
        kernel,
        out_shape=jax.ShapeDtypeStruct((B_p, d_out_p), jnp.float32),
        grid=(B_p // tb,),
        in_specs=in_specs,
        out_specs=pl.BlockSpec((tb, d_out_p), lambda i: (i, 0)),
        compiler_params=pltpu.CompilerParams(
            dimension_semantics=("parallel",)),
    )(*operands)

    return out[:B, :dims[-1]]


class MLP:
    """JAX/Pallas port of the PyTorch MLP: Linear+ReLU stack (last ReLU dropped),
    optional log_softmax(dim=1), executed as one fused Pallas kernel."""

    def __init__(self, dims, log_softmax=False, *, key=None,
                 dtype=jnp.float32, tb=128):
        self.dims = list(dims)
        self.log_softmax = log_softmax
        self.tb = tb
        if key is None:
            key = jax.random.PRNGKey(0)
        self.params = []
        for i in range(len(dims) - 1):
            key, kw, kb = jax.random.split(key, 3)
            bound = 1.0 / np.sqrt(dims[i])   # matches nn.Linear default init range
            w = jax.random.uniform(kw, (dims[i], dims[i + 1]),
                                   minval=-bound, maxval=bound, dtype=dtype)
            b = jax.random.uniform(kb, (dims[i + 1],),
                                   minval=-bound, maxval=bound, dtype=dtype)
            self.params.append((w, b))

        # Pre-pad once: weights → bf16 (din_p, dout_p), biases → f32 (1, dout_p),
        # all feature dims rounded up to multiples of 128 (lane-dense).
        dims_p = [max(_round_up(d, LANE), LANE) for d in self.dims]
        self.padded_params = []
        for i, (w, b) in enumerate(self.params):
            w_p = jnp.zeros((dims_p[i], dims_p[i + 1]), jnp.bfloat16)
            w_p = w_p.at[:self.dims[i], :self.dims[i + 1]].set(w.astype(jnp.bfloat16))
            b_p = jnp.zeros((1, dims_p[i + 1]), jnp.float32)
            b_p = b_p.at[0, :self.dims[i + 1]].set(b.astype(jnp.float32))
            self.padded_params.append((w_p, b_p))

    def __call__(self, x):
        return mlp_forward(x, self.padded_params, self.dims,
                           log_softmax=self.log_softmax, tb=self.tb)

    # pure-JAX reference with matching bf16-matmul / f32-accumulate numerics
    def reference(self, x):
        h = x
        n = len(self.params)
        for li, (w, b) in enumerate(self.params):
            h = jnp.dot(h.astype(jnp.bfloat16), w.astype(jnp.bfloat16),
                        preferred_element_type=jnp.float32) + b.astype(jnp.float32)
            if li != n - 1:
                h = jnp.maximum(h, 0.0)
        if self.log_softmax:
            h = jax.nn.log_softmax(h, axis=1)
        return h


if __name__ == "__main__":
    key = jax.random.PRNGKey(0)
    key, kx, kp1, kp2 = jax.random.split(key, 4)

    dims = [32, 64, 16]        # small MLP: 32 -> 64 -> 16
    batch = 256                # 2 grid steps of tb=128 (both v7x TCs get work)
    x = jax.random.normal(kx, (batch, dims[0]), dtype=jnp.float32)

    # With log_softmax head
    mlp_ls = MLP(dims, log_softmax=True, key=kp1)
    out_ls = jax.block_until_ready(mlp_ls(x))
    np.testing.assert_allclose(np.asarray(out_ls), np.asarray(mlp_ls.reference(x)),
                               rtol=1e-3, atol=1e-3)

    # Plain linear head
    mlp_plain = MLP(dims, log_softmax=False, key=kp2)
    out_plain = jax.block_until_ready(mlp_plain(x))
    np.testing.assert_allclose(np.asarray(out_plain), np.asarray(mlp_plain.reference(x)),
                               rtol=1e-3, atol=1e-3)

    assert np.isfinite(np.asarray(out_ls)).all()
    assert np.isfinite(np.asarray(out_plain)).all()
    print("KERNEL_OK")
</pallas_src>

<mosaic_0001>
module attributes {stable_mosaic.version = 11 : i64} {
  func.func @_mlp_fused_kernel(%arg0: i32, %arg1: memref<128x128xbf16, #tpu.memory_space<vmem>>, %arg2: memref<128x128xbf16, #tpu.memory_space<vmem>>, %arg3: memref<1x128xf32, #tpu.memory_space<vmem>>, %arg4: memref<128x128xbf16, #tpu.memory_space<vmem>>, %arg5: memref<1x128xf32, #tpu.memory_space<vmem>>, %arg6: memref<128x128xf32, #tpu.memory_space<vmem>>) attributes {dimension_semantics = [#tpu.dimension_semantics<parallel>], iteration_bounds = array<i64: 2>, scalar_prefetch = 0 : i64, scratch_operands = 0 : i64, tpu.core_type = #tpu.core_type<tc>, window_params = [{transform_indices = @transform_0, window_bounds = array<i64: 128, 128>}, {pipeline_mode = #tpu.pipeline_mode<synchronous>, transform_indices = @transform_1, window_bounds = array<i64: 128, 128>}, {pipeline_mode = #tpu.pipeline_mode<synchronous>, transform_indices = @transform_2, window_bounds = array<i64: 1, 128>}, {pipeline_mode = #tpu.pipeline_mode<synchronous>, transform_indices = @transform_3, window_bounds = array<i64: 128, 128>}, {pipeline_mode = #tpu.pipeline_mode<synchronous>, transform_indices = @transform_4, window_bounds = array<i64: 1, 128>}, {transform_indices = @transform_5, window_bounds = array<i64: 128, 128>}]} {
    %c0 = arith.constant 0 : index
    %c0_0 = arith.constant 0 : index
    %0 = vector.load %arg1[%c0, %c0_0] : memref<128x128xbf16, #tpu.memory_space<vmem>>, vector<128x128xbf16>
    %c0_1 = arith.constant 0 : index
    %c0_2 = arith.constant 0 : index
    %1 = vector.load %arg2[%c0_1, %c0_2] : memref<128x128xbf16, #tpu.memory_space<vmem>>, vector<128x128xbf16>
    %c0_3 = arith.constant 0 : index
    %c0_4 = arith.constant 0 : index
    %2 = vector.load %arg3[%c0_3, %c0_4] : memref<1x128xf32, #tpu.memory_space<vmem>>, vector<1x128xf32>
    %cst = arith.constant dense<0.000000e+00> : vector<128x128xf32>
    %3 = tpu.matmul %0, %1, %cst {dimension_numbers = #tpu.dot_dimension_numbers<[1], [0], [0], [1], [0, 0, 1, 1], [], []>} : vector<128x128xbf16>, vector<128x128xbf16>, vector<128x128xf32> -> vector<128x128xf32>
    %4 = vector.broadcast %2 : vector<1x128xf32> to vector<128x128xf32>
    %5 = arith.addf %3, %4 : vector<128x128xf32>
    %cst_5 = arith.constant 0.000000e+00 : f32
    %6 = vector.broadcast %cst_5 : f32 to vector<128x128xf32>
    %7 = arith.maximumf %5, %6 : vector<128x128xf32>
    %8 = arith.truncf %7 : vector<128x128xf32> to vector<128x128xbf16>
    %c0_6 = arith.constant 0 : index
    %c0_7 = arith.constant 0 : index
    %9 = vector.load %arg4[%c0_6, %c0_7] : memref<128x128xbf16, #tpu.memory_space<vmem>>, vector<128x128xbf16>
    %c0_8 = arith.constant 0 : index
    %c0_9 = arith.constant 0 : index
    %10 = vector.load %arg5[%c0_8, %c0_9] : memref<1x128xf32, #tpu.memory_space<vmem>>, vector<1x128xf32>
    %cst_10 = arith.constant dense<0.000000e+00> : vector<128x128xf32>
    %11 = tpu.matmul %8, %9, %cst_10 {dimension_numbers = #tpu.dot_dimension_numbers<[1], [0], [0], [1], [0, 0, 1, 1], [], []>} : vector<128x128xbf16>, vector<128x128xbf16>, vector<128x128xf32> -> vector<128x128xf32>
    %12 = vector.broadcast %10 : vector<1x128xf32> to vector<128x128xf32>
    %13 = arith.addf %11, %12 : vector<128x128xf32>
    %14 = tpu.iota {dimensions = array<i32: 1>} : vector<128x128xi32>
    %c16_i32 = arith.constant 16 : i32
    %15 = vector.broadcast %c16_i32 : i32 to vector<128x128xi32>
    %16 = arith.cmpi slt, %14, %15 : vector<128x128xi32>
    %cst_11 = arith.constant -1.000000e+30 : f32
    %17 = vector.broadcast %cst_11 : f32 to vector<128x128xf32>
    %18 = arith.select %16, %13, %17 : vector<128x128xi1>, vector<128x128xf32>
    %cst_12 = arith.constant dense<0xFF800000> : vector<128xf32>
    %19 = vector.multi_reduction <maximumf>, %18, %cst_12 [1] : vector<128x128xf32> to vector<128xf32>
    %20 = vector.shape_cast %19 : vector<128xf32> to vector<128x1xf32>
    %21 = vector.broadcast %20 : vector<128x1xf32> to vector<128x128xf32>
    %22 = arith.subf %18, %21 : vector<128x128xf32>
    %23 = math.exp %22 : vector<128x128xf32>
    %cst_13 = arith.constant 0.000000e+00 : f32
    %24 = vector.broadcast %cst_13 : f32 to vector<128x128xf32>
    %25 = arith.select %16, %23, %24 : vector<128x128xi1>, vector<128x128xf32>
    %cst_14 = arith.constant dense<0.000000e+00> : vector<128xf32>
    %26 = vector.multi_reduction <add>, %25, %cst_14 [1] : vector<128x128xf32> to vector<128xf32>
    %27 = vector.shape_cast %26 : vector<128xf32> to vector<128x1xf32>
    %28 = vector.broadcast %20 : vector<128x1xf32> to vector<128x128xf32>
    %29 = arith.subf %18, %28 : vector<128x128xf32>
    %30 = math.log %27 : vector<128x1xf32>
    %31 = vector.broadcast %30 : vector<128x1xf32> to vector<128x128xf32>
    %32 = arith.subf %29, %31 : vector<128x128xf32>
    %c0_15 = arith.constant 0 : index
    %c0_16 = arith.constant 0 : index
    %33 = vector.load %arg6[%c0_15, %c0_16] : memref<128x128xf32, #tpu.memory_space<vmem>>, vector<128x128xf32>
    tpu.vector_store %arg6[%c0_15, %c0_16], %32 {strides = array<i32>} : memref<128x128xf32, #tpu.memory_space<vmem>>, vector<128x128xf32>,
    return
  }
  func.func @transform_0(%arg0: i32) -> (i32, i32) {
    %c0_i32 = arith.constant 0 : i32
    %c0_i32_0 = arith.constant 0 : i32
    return %arg0, %c0_i32 : i32, i32
  }
  func.func @transform_1(%arg0: i32) -> (i32, i32) {
    %c0_i32 = arith.constant 0 : i32
    %c0_i32_0 = arith.constant 0 : i32
    %c0_i32_1 = arith.constant 0 : i32
    return %c0_i32, %c0_i32_0 : i32, i32
  }
  func.func @transform_2(%arg0: i32) -> (i32, i32) {
    %c0_i32 = arith.constant 0 : i32
    %c0_i32_0 = arith.constant 0 : i32
    %c0_i32_1 = arith.constant 0 : i32
    return %c0_i32, %c0_i32_0 : i32, i32
  }
  func.func @transform_3(%arg0: i32) -> (i32, i32) {
    %c0_i32 = arith.constant 0 : i32
    %c0_i32_0 = arith.constant 0 : i32
    %c0_i32_1 = arith.constant 0 : i32
    return %c0_i32, %c0_i32_0 : i32, i32
  }
  func.func @transform_4(%arg0: i32) -> (i32, i32) {
    %c0_i32 = arith.constant 0 : i32
    %c0_i32_0 = arith.constant 0 : i32
    %c0_i32_1 = arith.constant 0 : i32
    return %c0_i32, %c0_i32_0 : i32, i32
  }
  func.func @transform_5(%arg0: i32) -> (i32, i32) {
    %c0_i32 = arith.constant 0 : i32
    %c0_i32_0 = arith.constant 0 : i32
    return %arg0, %c0_i32 : i32, i32
  }
}

</mosaic_0001>

<bundles_post_ra>
// kernel: tpu_custom_call.1
= control target key start
LH: loop header
LB: loop body
LE: loop exit
PB: predicated region body
PF: predicated region fallthrough
CT: control target
= control target key end

     0   :  { %10 = vsyncpa [#allocation3], 0  ;;  %s1811_s0 = inlined_call_operand.hbm [shape: bf16[256,128], index: 0, kind: input, shape index: {}]   ;;  %s1812_s1 = inlined_call_operand.hbm [shape: bf16[128,128], index: 1, kind: input, shape index: {}]   ;;  %s1813_s2 = inlined_call_operand.vmem [shape: f32[1,128], index: 2, kind: input, shape index: {}]   ;;  %s1814_s3 = inlined_call_operand.hbm [shape: bf16[128,128], index: 3, kind: input, shape index: {}]   ;;  %s1815_s4 = inlined_call_operand.vmem [shape: f32[1,128], index: 4, kind: input, shape index: {}]   ;;  %s1816_s5 = inlined_call_operand.hbm [shape: f32[256,128], index: 5, kind: output, shape index: {}]  }
   0x1   :  { %12 = vsyncpa [#allocation3 + $0x1], 0 }
   0x2   :  { %13 = vsyncpa [#allocation6], 0 }
   0x3   :  { %14 = vsyncpa [#allocation4], 0 }
   0x4   :  { %16 = vsyncpa [#allocation4 + $0x1], 0  ;;  %s1412_s18 = smov 0   ;;  %s1414_s19 = smov 0  }
   0x5   :  { %s1416_s20 = smov 0   ;;  %s1418_s21 = smov 0  }
   0x6 LB: > { %s1433_s22 = sadd.s32 4294967295, %s1374_s21   ;;  %s921_s23 = sadd.s32 4294967294, %s1374_s21   ;;  %s1374_s21 = sphi %s1418_s21, %s1828_s21   ;;  %s1370_s20 = sphi %s1416_s20, %s1827_s20   ;;  %s1366_s19 = sphi %s1414_s19, %s1826_s19   ;;  %s1362_s18 = sphi %s1412_s18, %s1825_s18  }
   0x7   : > { %p42_p0 = scmp.ne.s32.totalorder %s1366_s19, %s1362_s18  ;;  %p43_p1 = scmp.eq.s32.totalorder %s1433_s22, 0 }
   0x8   : > { %p150_p2 = scmp.eq.s32.totalorder %s1433_s22, 1  ;;  %p156_p3 = scmp.eq.s32.totalorder %s921_s23, 1 }
   0x9   : > { %p1442_p4 = por %p43_p1, %p42_p0  ;;  %p922_p5 = scmp.ge.s32.totalorder %s1374_s21, 1 }
   0xa   : > { %p1447_p6 = por %p156_p3, %p42_p0  ;;  %p163_p7 = scmp.lt.s32.totalorder %s1374_s21, 3 }
   0xb   : > { %s174_s28 = sshll.u32 %s1812_s1, 4  ;;  %s1376_s30 = smov [#allocation5]   ;;  %s175_s28 = int_to_ptr.hbm [resolvable:$true] %s174_s28 }
   0xc   : > { %p1455_p8 = pnand %p922_p5, %p163_p7  ;;  %s176_s6 = sshll.u32 %s1376_s30, 4  ;;  %s177_s6 = int_to_ptr.vmem [resolvable:$true] %s176_s6 }
   0xd   : > { %s191_s9 = sshll.u32 %s1814_s3, 4  ;;  %s1817_s10 = smov 64   ;;  %s192_s9 = int_to_ptr.hbm [resolvable:$true] %s191_s9 }
   0xe   : > { %p1089_p9 = pneg %p1455_p8  ;;  %s1378_s11 = smov 4  }
   0xf   : > { %s1379_s12 = smov [#allocation7]   ;;  %s1474_s14 = sadd.s32 1, %s1374_s21  }
  0x10   : > { %p1090_p10 = pnand %p1089_p9, %p43_p1  ;;  %s193_s13 = sshll.u32 %s1379_s12, 4  ;;  %s194_s13 = int_to_ptr.vmem [resolvable:$true] %s193_s13 }
  0x11   : > { %s29_s15 = sadd.s32 1, %s1370_s20  ;;  %s26_s16 = ssub.s32 %s1374_s21, %s1474_s14 }
  0x12   : > { %1092 = dma.hbm_to_vmem [thread:$0]  (!%p1090_p10), %s175_s28, 1024, %s177_s6, [#allocation6], %s1817_s10, %s1817_s10, %s1378_s11  }
  0x13   : > { %1095 = dma.hbm_to_vmem [thread:$0]  (!%p1090_p10), %s192_s9, 1024, %s194_s13, [#allocation6], %s1817_s10, %s1817_s10, %s1378_s11  }
  0x14   : > { %p36_p12 = scmp.ne.s32.totalorder %s1370_s20, %s1366_s19  ;;  %p27_p13 = scmp.eq.s32.totalorder %s26_s16, 0 }
  0x15   : > { %p37_p0 = scmp.eq.s32.totalorder %s1374_s21, 0  ;;  %p1106_p5 = scmp.lt.s32.totalorder %s1374_s21, 2 }
  0x16   : > { %p1484_p3 = por %p150_p2, %p36_p12  ;;  %s210_s26 = sand.u32 1, %s1370_s20  }
  0x17   : > { %s1490_s23 = scalar_select %p27_p13, %s1370_s20, %s29_s15  }
  0x18   : > { %p38_p7 = por %p37_p0, %p36_p12  ;;  %s926_s27 = sshll.u32 %s210_s26, 6 }
  0x19   : > { %s1035_s28 = sshll.u32 %s1374_s21, 6  ;;  %s214_s8 = scalar_lea.vmem [#allocation2], %s926_s27 }
  0x1a   : > { %s219_s7 = scalar_lea.hbm %s1811_s0, %s1035_s28  ;;  %s222_s9 = sshll.u32 %s214_s8, 4  ;;  %s223_s9 = int_to_ptr.vmem [resolvable:$true] %s222_s9 }
  0x1b   : > { %s220_s12 = sshll.u32 %s219_s7, 4  ;;  %p1497_p2 = pnand %p1106_p5, %p38_p7  ;;  %s221_s12 = int_to_ptr.hbm [resolvable:$true] %s220_s12 }
  0x1c   : > { %s211_s15 = scalar_lea.sflag [#allocation3], %s210_s26  ;;  %s1274_s16 = sshra.s32 %s221_s12, 4  ;;  %s1275_s16 = int_to_ptr.hbm [resolvable:$true] %s1274_s16 }
  0x1d   : > { %s1276_s10 = scalar_lea.hbm %s1275_s16, 64  ;;  %p1278_p10 = pneg %p1497_p2 }
  0x1e   : > { %p1277_p9 = scmp.ne.s32.totalorder %s1275_s16, %s1276_s10  ;;  %s1281_s30 = scalar_lea.hbm %s1811_s0, 128 }
  0x1f   : > { %p1282_p0 = scmp.lt.s32.totalorder %s1275_s16, %s1811_s0  ;;  %p1283_p5 = scmp.lt.s32.totalorder %s1281_s30, %s1276_s10 }
  0x20   : > { %p1279_p12 = pnand %p1278_p10, %p1277_p9 }
  0x21   : > { %p1284_p7 = por %p1283_p5, %p1282_p0 }
  0x22   : > { %p1280_p13 = pneg %p1279_p12 }
  0x24   : > { %p1285_p11 = pnand %p1284_p7, %p1280_p13 }
  0x26   : > { %1288 = shalt.err (!%p1285_p11)
}
  0x27   : > { %s1823_s26 = smov 64   ;;  %234 = sbr.rel (%p1455_p8) target bundleno = 675 (0x2a3), region = 40 }
  0x28   : > { %1099 = dma.hbm_to_vmem [thread:$0]  (!%p1497_p2), %s221_s12, 1024, %s223_s9, %s211_s15, %s1823_s26, %s1823_s26, %s1378_s11  }
  0x29   : > { %s1517_s8 = sand.u32 (!%p1455_p8), 1, %s1366_s19  }
  0x2a   : > { %s930_s16 = sshll.u32 (!%p1455_p8), %s1517_s8, 6  ;;  %s237_s10 = scalar_lea.sflag (!%p1455_p8), [#allocation3], %s1517_s8 }
  0x2b   : > { %s1521_s28 = scalar_lea.vmem (!%p1455_p8), [#allocation2], %s930_s16 }
  0x2c   : > { %1349 = dma.done.wait (%p1442_p4), %s237_s10, 1024  }
  0x2d   : > { %1351 = vsyncadd (%p1442_p4), %s237_s10, 4294966272 }
  0x2e   : > { %1353 = dma.done.wait (%p43_p1), [#allocation6], 2048  }
  0x2f   : > { %1355 = vsyncadd (%p43_p1), [#allocation6], 4294965248  ;;  %v1051_v0 = vld [vmem:[#allocation5 + $0x38] sm:$0xff]  ;;  %v1050_v1 = vld [vmem:[#allocation5 + $0x30] sm:$0xff]  ;;  %s933_s12 = sshll.u32 %s1517_s8, 7  ;;  %s1060_s15 = sshll.u32 %s1433_s22, 7 }
  0x30   : > { %412 = vmatpush.bf16.msra.mxu0 %v1051_v0  ;;  %1061 = vmatpush.bf16.msra.mxu2 %v1051_v0  ;;  %v1049_v2 = vld [vmem:[#allocation5 + $0x28] sm:$0xff]  ;;  %v1048_v3 = vld [vmem:[#allocation5 + $0x20] sm:$0xff]  ;;  %v1047_v4 = vld [vmem:[#allocation5 + $0x18] sm:$0xff]  ;;  %s1744_s13 = scalar_lea.vmem [#allocation8], %s933_s12  ;;  %s825_s6 = scalar_lea.hbm %s1816_s5, %s1060_s15 }
  0x31   : > { %v1046_v5 = vld [vmem:[#allocation5 + $0x10] sm:$0xff]  ;;  %v1045_v6 = vld [vmem:[#allocation5 + $0x8] sm:$0xff]  ;;  %v1044_v7 = vld [vmem:[#allocation5] sm:$0xff]  ;;  %s826_s7 = sshll.u32 %s1744_s13, 4  ;;  %s828_s26 = sshll.u32 %s825_s6, 4  ;;  %s827_s7 = int_to_ptr.vmem [resolvable:$true] %s826_s7  ;;  %s829_s26 = int_to_ptr.hbm [resolvable:$true] %s828_s26 }
  0x32   : > { %v1036_v8 = vld [vmem:[%s1521_s28] sm:$0xff]  ;;  %v1037_v10 = vld [vmem:[%s1521_s28 + $0x8] sm:$0xff]  ;;  %v1059_v12 = vld [vmem:[#allocation7 + $0x38] sm:$0xff]  ;;  %s814_s22 = scalar_lea.sflag [#allocation4], %s1517_s8  ;;  %s1318_s16 = sshra.s32 %s829_s26, 4  ;;  %s1319_s16 = int_to_ptr.hbm [resolvable:$true] %s1318_s16 }
  0x33   : > { %v1040_v9 = vld [vmem:[%s1521_s28 + $0x20] sm:$0xff]  ;;  %v1041_v11 = vld [vmem:[%s1521_s28 + $0x28] sm:$0xff]  ;;  %553 = vmatpush.bf16.msra.mxu1 %v1059_v12  ;;  %v1058_v13 = vld [vmem:[#allocation7 + $0x30] sm:$0xff]  ;;  %1069 = vmatpush.bf16.msra.mxu3 %v1059_v12  ;;  %s1320_s10 = scalar_lea.hbm %s1319_s16, 128  ;;  %s1324_s29 = scalar_lea.hbm %s1816_s5, 256 }
  0x34   : > { %413 = vmatpush.bf16.msra.mxu0 %v1050_v1  ;;  %1062 = vmatpush.bf16.msra.mxu2 %v1050_v1  ;;  %v1057_v14 = vld [vmem:[#allocation7 + $0x28] sm:$0xff]  ;;  %v1056_v15 = vld [vmem:[#allocation7 + $0x20] sm:$0xff]  ;;  %v1038_v16 = vld [vmem:[%s1521_s28 + $0x10] sm:$0xff]  ;;  %p1321_p1 = scmp.ne.s32.totalorder %s1319_s16, %s1320_s10  ;;  %p1325_p11 = scmp.lt.s32.totalorder %s1319_s16, %s1816_s5 }
  0x35   : > { %v1042_v17 = vld [vmem:[%s1521_s28 + $0x30] sm:$0xff]  ;;  %v1039_v18 = vld [vmem:[%s1521_s28 + $0x18] sm:$0xff]  ;;  %v1053_v22 = vld [vmem:[#allocation7 + $0x8] sm:$0xff]  ;;  %p1326_p2 = scmp.lt.s32.totalorder %s1324_s29, %s1320_s10 }
  0x36   : > { %v1043_v19 = vld [vmem:[%s1521_s28 + $0x38] sm:$0xff]  ;;  %v1054_v21 = vld [vmem:[#allocation7 + $0x10] sm:$0xff]  ;;  %v1052_v23 = vld [vmem:[#allocation7] sm:$0xff]  ;;  %p1322_p4 = pnand %p1321_p1, %p1484_p3 }
  0x37   : > { %554 = vmatpush.bf16.msra.mxu1 %v1058_v13  ;;  %1070 = vmatpush.bf16.msra.mxu3 %v1058_v13  ;;  %v1055_v20 = vld [vmem:[#allocation7 + $0x18] sm:$0xff]  ;;  %v1148_v25 = vld [vmem:[%s1813_s2] ss:$0 sm:$0xff]  ;;  %p1327_p9 = por %p1326_p2, %p1325_p11 }
  0x38   : > { %414 = vmatpush.bf16.msra.mxu0 %v1049_v2  ;;  %1063 = vmatpush.bf16.msra.mxu2 %v1049_v2  ;;  %p1323_p8 = pneg %p1322_p4 }
  0x3a   : > { %p1328_p10 = pnand %p1327_p9, %p1323_p8 }
  0x3b   : > { %555 = vmatpush.bf16.msra.mxu1 %v1057_v14  ;;  %1071 = vmatpush.bf16.msra.mxu3 %v1057_v14 }
  0x3c   : > { %415 = vmatpush.bf16.msra.mxu0 %v1048_v3  ;;  %1064 = vmatpush.bf16.msra.mxu2 %v1048_v3 }
  0x3f   : > { %556 = vmatpush.bf16.msra.mxu1 %v1056_v15  ;;  %1072 = vmatpush.bf16.msra.mxu3 %v1056_v15 }
  0x40   : > { %416 = vmatpush.bf16.msra.mxu0 %v1047_v4  ;;  %1065 = vmatpush.bf16.msra.mxu2 %v1047_v4 }
  0x43   : > { %557 = vmatpush.bf16.msra.mxu1 %v1055_v20  ;;  %1073 = vmatpush.bf16.msra.mxu3 %v1055_v20 }
  0x44   : > { %417 = vmatpush.bf16.msra.mxu0 %v1046_v5  ;;  %1066 = vmatpush.bf16.msra.mxu2 %v1046_v5 }
  0x47   : > { %558 = vmatpush.bf16.msra.mxu1 %v1054_v21  ;;  %1074 = vmatpush.bf16.msra.mxu3 %v1054_v21 }
  0x48   : > { %418 = vmatpush.bf16.msra.mxu0 %v1045_v6  ;;  %1067 = vmatpush.bf16.msra.mxu2 %v1045_v6 }
  0x4b   : > { %559 = vmatpush.bf16.msra.mxu1 %v1053_v22  ;;  %1075 = vmatpush.bf16.msra.mxu3 %v1053_v22 }
  0x4c   : > { %419 = vmatpush.bf16.msra.mxu0 %v1044_v7  ;;  %1068 = vmatpush.bf16.msra.mxu2 %v1044_v7 }
  0x4f   : > { %420 = vmatmul.bf16.vlgmr.msra.gmra.mxu0 %v1036_v8  ;;  %440 = vmatmul.bf16.vlgmr.msra.gmra.mxu2 %v1040_v9 }
  0x50   : > { %560 = vmatpush.bf16.msra.mxu1 %v1052_v23  ;;  %1076 = vmatpush.bf16.msra.mxu3 %v1052_v23 }
  0x5f   : > { %425 = vmatmul.bf16.gmra.mxu0 %v1037_v10  ;;  %445 = vmatmul.bf16.gmra.mxu2 %v1041_v11 }
  0x6f   : > { %430 = vmatmul.bf16.gmra.mxu0 %v1038_v16  ;;  %450 = vmatmul.bf16.gmra.mxu2 %v1042_v17  ;;  %v602_v17 = vlaneseq }
  0x7f   : > { %435 = vmatmul.bf16.gmra.mxu0 %v1039_v18  ;;  %455 = vmatmul.bf16.gmra.mxu2 %v1043_v19  ;;  %v1542_v18 = vand.u32 127, %v602_v17  ;;  %v1547_v19 = vld [vmem:[%s1815_s4] ss:$0 sm:$0xff] }
  0x81   : > { %vm604_vm0 = vcmp.lt.s32.totalorder %v1542_v18, 16 }
  0xcc   : > { %v421_v24 = vpop.f32.mrf.mxu0 }
  0xcd   : > { %v422_v27 = vadd.f32 %v1148_v25, %v421_v24 }
  0xcf   : > { %v461_v30 = vmax.f32 %v422_v27, 0.0 }
  0xd2   : > { %v441_v26 = vpop.f32.mrf.mxu2 }
  0xd3   : > { %v442_v32 = vadd.f32 %v1148_v25, %v441_v26 }
  0xd4   : > { %v423_v28 = vpop.f32.mrf.mxu0 }
  0xd5   : > { %v424_v29 = vadd.f32 %v1148_v25, %v423_v28  ;;  %v469_v37 = vmax.f32 %v442_v32, 0.0 }
  0xd7   : > { %v462_v31 = vmax.f32 %v424_v29, 0.0 }
  0xd9   : > { %v477_v33 = vpack.c.bf16 %v462_v31, %v461_v30 }
  0xda   : > { %v443_v34 = vpop.f32.mrf.mxu2 }
  0xdb   : > { %v444_v35 = vadd.f32 %v1148_v25, %v443_v34  ;;  %561 = vmatmul.bf16.vlgmr.msra.gmra.mxu1 %v477_v33 }
  0xdc   : > { %v426_v36 = vpop.f32.mrf.mxu0 }
  0xdd   : > { %v470_v38 = vmax.f32 %v444_v35, 0.0  ;;  %v427_v41 = vadd.f32 %v1148_v25, %v426_v36 }
  0xdf   : > { %v481_v39 = vpack.c.bf16 %v470_v38, %v469_v37  ;;  %v463_v44 = vmax.f32 %v427_v41, 0.0 }
  0xe1   : > { %581 = vmatmul.bf16.vlgmr.msra.gmra.mxu3 %v481_v39 }
  0xe2   : > { %v446_v40 = vpop.f32.mrf.mxu2 }
  0xe3   : > { %v447_v46 = vadd.f32 %v1148_v25, %v446_v40 }
  0xe4   : > { %v428_v42 = vpop.f32.mrf.mxu0 }
  0xe5   : > { %v429_v43 = vadd.f32 %v1148_v25, %v428_v42  ;;  %v471_v51 = vmax.f32 %v447_v46, 0.0 }
  0xe7   : > { %v464_v45 = vmax.f32 %v429_v43, 0.0 }
  0xe9   : > { %v478_v47 = vpack.c.bf16 %v464_v45, %v463_v44 }
  0xea   : > { %v448_v48 = vpop.f32.mrf.mxu2 }
  0xeb   : > { %v449_v49 = vadd.f32 %v1148_v25, %v448_v48  ;;  %566 = vmatmul.bf16.gmra.mxu1 %v478_v47 }
  0xec   : > { %v431_v50 = vpop.f32.mrf.mxu0 }
  0xed   : > { %v472_v52 = vmax.f32 %v449_v49, 0.0  ;;  %v432_v55 = vadd.f32 %v1148_v25, %v431_v50 }
  0xef   : > { %v482_v53 = vpack.c.bf16 %v472_v52, %v471_v51  ;;  %v465_v58 = vmax.f32 %v432_v55, 0.0 }
  0xf1   : > { %586 = vmatmul.bf16.gmra.mxu3 %v482_v53 }
  0xf2   : > { %v451_v54 = vpop.f32.mrf.mxu2 }
  0xf3   : > { %v452_v60 = vadd.f32 %v1148_v25, %v451_v54 }
  0xf4   : > { %v433_v56 = vpop.f32.mrf.mxu0 }
  0xf5   : > { %v434_v57 = vadd.f32 %v1148_v25, %v433_v56  ;;  %v473_v1 = vmax.f32 %v452_v60, 0.0 }
  0xf7   : > { %v466_v59 = vmax.f32 %v434_v57, 0.0 }
  0xf9   : > { %v479_v61 = vpack.c.bf16 %v466_v59, %v465_v58 }
  0xfa   : > { %v453_v62 = vpop.f32.mrf.mxu2 }
  0xfb   : > { %v454_v63 = vadd.f32 %v1148_v25, %v453_v62  ;;  %571 = vmatmul.bf16.gmra.mxu1 %v479_v61 }
  0xfc   : > { %v436_v0 = vpop.f32.mrf.mxu0 }
  0xfd   : > { %v474_v2 = vmax.f32 %v454_v63, 0.0  ;;  %v437_v5 = vadd.f32 %v1148_v25, %v436_v0 }
  0xff   : > { %v483_v3 = vpack.c.bf16 %v474_v2, %v473_v1  ;;  %v467_v8 = vmax.f32 %v437_v5, 0.0 }
 0x101   : > { %591 = vmatmul.bf16.gmra.mxu3 %v483_v3 }
 0x102   : > { %v456_v4 = vpop.f32.mrf.mxu2 }
 0x103   : > { %v457_v10 = vadd.f32 %v1148_v25, %v456_v4 }
 0x104   : > { %v438_v6 = vpop.f32.mrf.mxu0 }
 0x105   : > { %v439_v7 = vadd.f32 %v1148_v25, %v438_v6  ;;  %v475_v14 = vmax.f32 %v457_v10, 0.0 }
 0x107   : > { %v468_v9 = vmax.f32 %v439_v7, 0.0 }
 0x109   : > { %v480_v11 = vpack.c.bf16 %v468_v9, %v467_v8 }
 0x10a   : > { %v458_v12 = vpop.f32.mrf.mxu2 }
 0x10b   : > { %v459_v13 = vadd.f32 %v1148_v25, %v458_v12  ;;  %576 = vmatmul.bf16.gmra.mxu1 %v480_v11 }
 0x10d   : > { %v476_v15 = vmax.f32 %v459_v13, 0.0 }
 0x10f   : > { %v484_v16 = vpack.c.bf16 %v476_v15, %v475_v14 }
 0x111   : > { %596 = vmatmul.bf16.gmra.mxu3 %v484_v16 }
 0x158   : > { %v562_v20 = vpop.f32.mrf.mxu1 }
 0x159   : > { %v563_v21 = vadd.f32 %v1547_v19, %v562_v20 }
 0x15b   : > { %v1553_v22 = vsel %vm604_vm0, %v563_v21, -1e+30 }
 0x15c   : > { %621 = vmax.xlane.f32.xlu0 %v1553_v22 }
 0x160   : > { %v564_v23 = vpop.f32.mrf.mxu1 }
 0x161   : > { %v565_v24 = vadd.f32 %v1547_v19, %v564_v23 }
 0x163   : > { %v1559_v25 = vsel %vm604_vm0, %v565_v24, -1e+30 }
 0x164   : > { %v582_v26 = vpop.f32.mrf.mxu3  ;;  %623 = vmax.xlane.f32.xlu0 %v1559_v25 }
 0x165   : > { %v583_v27 = vadd.f32 %v1547_v19, %v582_v26 }
 0x167   : > { %v1565_v28 = vsel %vm604_vm0, %v583_v27, -1e+30 }
 0x168   : > { %637 = vmax.xlane.f32.xlu2 %v1565_v28  ;;  %v567_v29 = vpop.f32.mrf.mxu1 }
 0x169   : > { %v568_v30 = vadd.f32 %v1547_v19, %v567_v29 }
 0x16b   : > { %v1571_v31 = vsel %vm604_vm0, %v568_v30, -1e+30 }
 0x16c   : > { %v584_v32 = vpop.f32.mrf.mxu3  ;;  %625 = vmax.xlane.f32.xlu1 %v1571_v31 }
 0x16d   : > { %v585_v33 = vadd.f32 %v1547_v19, %v584_v32 }
 0x16f   : > { %v1577_v34 = vsel %vm604_vm0, %v585_v33, -1e+30 }
 0x170   : > { %v569_v35 = vpop.f32.mrf.mxu1  ;;  %639 = vmax.xlane.f32.xlu0 %v1577_v34 }
 0x171   : > { %v570_v36 = vadd.f32 %v1547_v19, %v569_v35 }
 0x173   : > { %v1583_v37 = vsel %vm604_vm0, %v570_v36, -1e+30 }
 0x174   : > { %v587_v38 = vpop.f32.mrf.mxu3  ;;  %627 = vmax.xlane.f32.xlu1 %v1583_v37 }
 0x175   : > { %v588_v39 = vadd.f32 %v1547_v19, %v587_v38 }
 0x177   : > { %v1594_v43 = vsel %vm604_vm0, %v588_v39, -1e+30 }
 0x178   : > { %v572_v40 = vpop.f32.mrf.mxu1 }
 0x179   : > { %v573_v41 = vadd.f32 %v1547_v19, %v572_v40 }
 0x17b   : > { %v1590_v42 = vsel %vm604_vm0, %v573_v41, -1e+30 }
 0x17c   : > { %v589_v44 = vpop.f32.mrf.mxu3  ;;  %629 = vmax.xlane.f32.xlu2 %v1590_v42  ;;  %641 = vmax.xlane.f32.xlu1 %v1594_v43 }
 0x17d   : > { %v590_v45 = vadd.f32 %v1547_v19, %v589_v44 }
 0x17f   : > { %v1601_v47 = vsel %vm604_vm0, %v590_v45, -1e+30 }
 0x180   : > { %v574_v46 = vpop.f32.mrf.mxu1 }
 0x181   : > { %v575_v50 = vadd.f32 %v1547_v19, %v574_v46 }
 0x183   : > { %v1614_v54 = vsel %vm604_vm0, %v575_v50, -1e+30 }
 0x184   : > { %v592_v48 = vpop.f32.mrf.mxu3  ;;  %643 = vmax.xlane.f32.xlu2 %v1601_v47 }
 0x185   : > { %v593_v49 = vadd.f32 %v1547_v19, %v592_v48 }
 0x187   : > { %v1608_v51 = vsel %vm604_vm0, %v593_v49, -1e+30 }
 0x188   : > { %v577_v52 = vpop.f32.mrf.mxu1  ;;  %645 = vmax.xlane.f32.xlu0 %v1608_v51 }
 0x189   : > { %v578_v53 = vadd.f32 %v1547_v19, %v577_v52 }
 0x18b   : > { %v1619_v56 = vsel %vm604_vm0, %v578_v53, -1e+30 }
 0x18c   : > { %v594_v55 = vpop.f32.mrf.mxu3  ;;  %631 = vmax.xlane.f32.xlu2 %v1614_v54 }
 0x18d   : > { %v595_v62 = vadd.f32 %v1547_v19, %v594_v55 }
 0x18f   : > { %v1637_v0 = vsel %vm604_vm0, %v595_v62, -1e+30 }
 0x190   : > { %v579_v57 = vpop.f32.mrf.mxu1  ;;  %633 = vmax.xlane.f32.xlu0 %v1619_v56 }
 0x191   : > { %v580_v58 = vadd.f32 %v1547_v19, %v579_v57 }
 0x193   : > { %v1625_v59 = vsel %vm604_vm0, %v580_v58, -1e+30 }
 0x194   : > { %v597_v60 = vpop.f32.mrf.mxu3  ;;  %635 = vmax.xlane.f32.xlu1 %v1625_v59 }
 0x195   : > { %v598_v61 = vadd.f32 %v1547_v19, %v597_v60 }
 0x197   : > { %v1632_v63 = vsel %vm604_vm0, %v598_v61, -1e+30 }
 0x198   : > { %649 = vmax.xlane.f32.xlu2 %v1632_v63 }
 0x19c   : > { %v599_v1 = vpop.f32.mrf.mxu3  ;;  %647 = vmax.xlane.f32.xlu1 %v1637_v0 }
 0x19d   : > { %v600_v2 = vadd.f32 %v1547_v19, %v599_v1 }
 0x19f   : > { %v1643_v3 = vsel %vm604_vm0, %v600_v2, -1e+30 }
 0x1a0   : > { %651 = vmax.xlane.f32.xlu0 %v1643_v3 }
 0x1cf   : > { %v622_v4 = vpop.xlane.xlu0 %621 }
 0x1d0   : > { %v1647_v5 = vsub.f32 %v1553_v22, %v622_v4 }
 0x1d2   : > { %v669_v6 = vmul.f32 1.442695, %v1647_v5 }
 0x1d4   : > { %1150 = vpow2.f32 %v669_v6 }
 0x1d7   : > { %v624_v7 = vpop.xlane.xlu0 %623 }
 0x1d8   : > { %v1651_v8 = vsub.f32 %v1559_v25, %v624_v7 }
 0x1da   : > { %v1151_v9 = vpop.eup %1150  ;;  %v671_v10 = vmul.f32 1.442695, %v1651_v8 }
 0x1db   : > { %v638_v11 = vpop.xlane.xlu2 %637  ;;  %v701_v12 = vsel %vm604_vm0, %v1151_v9, 0.0 }
 0x1dc   : > { %1152 = vpow2.f32 %v671_v10  ;;  %v1657_v13 = vsub.f32 %v1565_v28, %v638_v11  ;;  %717 = vadd.xlane.f32.xlu1 %v701_v12 }
 0x1de   : > { %v685_v14 = vmul.f32 1.442695, %v1657_v13 }
 0x1df   : > { %v626_v15 = vpop.xlane.xlu1 %625 }
 0x1e0   : > { %1154 = vpow2.f32 %v685_v14  ;;  %v1661_v16 = vsub.f32 %v1571_v31, %v626_v15 }
 0x1e2   : > { %v1153_v17 = vpop.eup %1152  ;;  %v673_v19 = vmul.f32 1.442695, %v1661_v16 }
 0x1e3   : > { %v640_v20 = vpop.xlane.xlu0 %639  ;;  %v702_v21 = vsel %vm604_vm0, %v1153_v17, 0.0 }
 0x1e4   : > { %v1667_v22 = vsub.f32 %v1577_v34, %v640_v20  ;;  %719 = vadd.xlane.f32.xlu2 %v702_v21  ;;  %1156 = vpow2.f32 %v673_v19 }
 0x1e6   : > { %v1155_v23 = vpop.eup %1154  ;;  %v687_v24 = vmul.f32 1.442695, %v1667_v22 }
 0x1e7   : > { %v628_v25 = vpop.xlane.xlu1 %627  ;;  %v709_v26 = vsel %vm604_vm0, %v1155_v23, 0.0 }
 0x1e8   : > { %1158 = vpow2.f32 %v687_v24  ;;  %v1673_v27 = vsub.f32 %v1583_v37, %v628_v25  ;;  %733 = vadd.xlane.f32.xlu0 %v709_v26 }
 0x1ea   : > { %v675_v28 = vmul.f32 1.442695, %v1673_v27  ;;  %v1157_v29 = vpop.eup %1156 }
 0x1eb   : > { %v703_v33 = vsel %vm604_vm0, %v1157_v29, 0.0 }
 0x1ec   : > { %1160 = vpow2.f32 %v675_v28 }
 0x1ee   : > { %v1159_v30 = vpop.eup %1158 }
 0x1ef   : > { %v630_v31 = vpop.xlane.xlu2 %629  ;;  %v642_v32 = vpop.xlane.xlu1 %641  ;;  %v710_v34 = vsel %vm604_vm0, %v1159_v30, 0.0 }
 0x1f0   : > { %v1681_v35 = vsub.f32 %v1594_v43, %v642_v32  ;;  %721 = vadd.xlane.f32.xlu0 %v703_v33  ;;  %735 = vadd.xlane.f32.xlu1 %v710_v34  ;;  %v1685_v37 = vsub.f32 %v1590_v42, %v630_v31 }
 0x1f2   : > { %v689_v36 = vmul.f32 1.442695, %v1681_v35  ;;  %v1161_v38 = vpop.eup %1160  ;;  %v677_v39 = vmul.f32 1.442695, %v1685_v37 }
 0x1f3   : > { %v704_v41 = vsel %vm604_vm0, %v1161_v38, 0.0 }
 0x1f4   : > { %1162 = vpow2.f32 %v689_v36 }
 0x1f5   : > { %1164 = vpow2.f32 %v677_v39 }
 0x1f7   : > { %v644_v40 = vpop.xlane.xlu2 %643 }
 0x1f8   : > { %v1691_v44 = vsub.f32 %v1601_v47, %v644_v40  ;;  %723 = vadd.xlane.f32.xlu1 %v704_v41 }
 0x1fa   : > { %v691_v43 = vmul.f32 1.442695, %v1691_v44  ;;  %v1163_v45 = vpop.eup %1162 }
 0x1fb   : > { %v646_v46 = vpop.xlane.xlu0 %645  ;;  %v711_v48 = vsel %vm604_vm0, %v1163_v45, 0.0  ;;  %v1165_v52 = vpop.eup %1164 }
 0x1fc   : > { %1166 = vpow2.f32 %v691_v43  ;;  %v1695_v42 = vsub.f32 %v1608_v51, %v646_v46  ;;  %737 = vadd.xlane.f32.xlu2 %v711_v48  ;;  %v705_v60 = vsel %vm604_vm0, %v1165_v52, 0.0 }
 0x1fe   : > { %v693_v49 = vmul.f32 1.442695, %v1695_v42 }
 0x1ff   : > { %v632_v50 = vpop.xlane.xlu2 %631 }
 0x200   : > { %1168 = vpow2.f32 %v693_v49  ;;  %v1701_v47 = vsub.f32 %v1614_v54, %v632_v50 }
 0x202   : > { %v1167_v53 = vpop.eup %1166  ;;  %v679_v55 = vmul.f32 1.442695, %v1701_v47 }
 0x203   : > { %v634_v57 = vpop.xlane.xlu0 %633  ;;  %v712_v51 = vsel %vm604_vm0, %v1167_v53, 0.0 }
 0x204   : > { %1170 = vpow2.f32 %v679_v55  ;;  %v1707_v58 = vsub.f32 %v1619_v56, %v634_v57  ;;  %739 = vadd.xlane.f32.xlu0 %v712_v51  ;;  %725 = vadd.xlane.f32.xlu2 %v705_v60 }
 0x206   : > { %v1169_v61 = vpop.eup %1168  ;;  %v681_v54 = vmul.f32 1.442695, %v1707_v58 }
 0x207   : > { %v636_v62 = vpop.xlane.xlu1 %635  ;;  %v713_v1 = vsel %vm604_vm0, %v1169_v61, 0.0 }
 0x208   : > { %1172 = vpow2.f32 %v681_v54  ;;  %v1715_v2 = vsub.f32 %v1625_v59, %v636_v62  ;;  %741 = vadd.xlane.f32.xlu1 %v713_v1 }
 0x20a   : > { %v1171_v4 = vpop.eup %1170  ;;  %v683_v56 = vmul.f32 1.442695, %v1715_v2 }
 0x20b   : > { %v650_v6 = vpop.xlane.xlu2 %649  ;;  %v706_v7 = vsel %vm604_vm0, %v1171_v4, 0.0 }
 0x20c   : > { %1174 = vpow2.f32 %v683_v56  ;;  %v1721_v9 = vsub.f32 %v1632_v63, %v650_v6  ;;  %727 = vadd.xlane.f32.xlu0 %v706_v7 }
 0x20e   : > { %v1173_v10 = vpop.eup %1172  ;;  %v697_v11 = vmul.f32 1.442695, %v1721_v9 }
 0x20f   : > { %v648_v12 = vpop.xlane.xlu1 %647  ;;  %v707_v59 = vsel %vm604_vm0, %v1173_v10, 0.0 }
 0x210   : > { %1176 = vpow2.f32 %v697_v11  ;;  %v1727_v14 = vsub.f32 %v1637_v0, %v648_v12  ;;  %729 = vadd.xlane.f32.xlu1 %v707_v59 }
 0x212   : > { %v1175_v15 = vpop.eup %1174  ;;  %v695_v17 = vmul.f32 1.442695, %v1727_v14 }
 0x213   : > { %v652_v19 = vpop.xlane.xlu0 %651  ;;  %v708_v63 = vsel %vm604_vm0, %v1175_v15, 0.0 }
 0x214   : > { %1178 = vpow2.f32 %v695_v17  ;;  %v1733_v20 = vsub.f32 %v1643_v3, %v652_v19  ;;  %731 = vadd.xlane.f32.xlu2 %v708_v63 }
 0x216   : > { %v1177_v21 = vpop.eup %1176  ;;  %v699_v23 = vmul.f32 1.442695, %v1733_v20 }
 0x217   : > { %v715_v0 = vsel %vm604_vm0, %v1177_v21, 0.0 }
 0x218   : > { %1180 = vpow2.f32 %v699_v23  ;;  %745 = vadd.xlane.f32.xlu0 %v715_v0 }
 0x21a   : > { %v1179_v24 = vpop.eup %1178 }
 0x21b   : > { %v714_v25 = vsel %vm604_vm0, %v1179_v24, 0.0 }
 0x21c   : > { %743 = vadd.xlane.f32.xlu2 %v714_v25 }
 0x21e   : > { %v1181_v26 = vpop.eup %1180 }
 0x21f   : > { %v716_v28 = vsel %vm604_vm0, %v1181_v26, 0.0 }
 0x220   : > { %747 = vadd.xlane.f32.xlu1 %v716_v28 }
 0x24f   : > { %v718_v3 = vpop.xlane.xlu1 %717 }
 0x250   : > { %1182 = vlog2.f32 %v718_v3 }
 0x256   : > { %v1183_v29 = vpop.eup %1182 }
 0x257   : > { %v750_v30 = vmul.f32 0.6931472, %v1183_v29  ;;  %v720_v31 = vpop.xlane.xlu2 %719 }
 0x258   : > { %1184 = vlog2.f32 %v720_v31 }
 0x259   : > { %v781_v32 = vsub.f32 %v1647_v5, %v750_v30 }
 0x25b   : > { %797 = vst [vmem:[%s1744_s13] sm:$0xff] %v781_v32  ;;  %v734_v33 = vpop.xlane.xlu0 %733 }
 0x25c   : > { %1186 = vlog2.f32 %v734_v33 }
 0x25e   : > { %v1185_v18 = vpop.eup %1184 }
 0x25f   : > { %v752_v34 = vmul.f32 0.6931472, %v1185_v18 }
 0x261   : > { %v782_v36 = vsub.f32 %v1651_v8, %v752_v34 }
 0x262   : > { %v1187_v38 = vpop.eup %1186 }
 0x263   : > { %798 = vst [vmem:[%s1744_s13 + $0x8] sm:$0xff] %v782_v36  ;;  %v766_v39 = vmul.f32 0.6931472, %v1187_v38  ;;  %v736_v40 = vpop.xlane.xlu1 %735  ;;  %v722_v41 = vpop.xlane.xlu0 %721 }
 0x264   : > { %1188 = vlog2.f32 %v736_v40 }
 0x265   : > { %v789_v5 = vsub.f32 %v1657_v13, %v766_v39  ;;  %1190 = vlog2.f32 %v722_v41 }
 0x267   : > { %805 = vst [vmem:[%s1744_s13 + $0x40] sm:$0xff] %v789_v5 }
 0x26a   : > { %v1189_v43 = vpop.eup %1188 }
 0x26b   : > { %v1191_v45 = vpop.eup %1190  ;;  %v768_v46 = vmul.f32 0.6931472, %v1189_v43  ;;  %v724_v48 = vpop.xlane.xlu1 %723 }
 0x26c   : > { %v754_v49 = vmul.f32 0.6931472, %v1191_v45  ;;  %1192 = vlog2.f32 %v724_v48 }
 0x26d   : > { %v790_v8 = vsub.f32 %v1667_v22, %v768_v46 }
 0x26e   : > { %v783_v50 = vsub.f32 %v1661_v16, %v754_v49 }
 0x26f   : > { %806 = vst [vmem:[%s1744_s13 + $0x48] sm:$0xff] %v790_v8  ;;  %v738_v52 = vpop.xlane.xlu2 %737 }
 0x270   : > { %799 = vst [vmem:[%s1744_s13 + $0x10] sm:$0xff] %v783_v50  ;;  %1194 = vlog2.f32 %v738_v52 }
 0x272   : > { %v1193_v53 = vpop.eup %1192 }
 0x273   : > { %v756_v13 = vmul.f32 0.6931472, %v1193_v53 }
 0x275   : > { %v784_v55 = vsub.f32 %v1673_v27, %v756_v13 }
 0x276   : > { %v1195_v57 = vpop.eup %1194 }
 0x277   : > { %800 = vst [vmem:[%s1744_s13 + $0x18] sm:$0xff] %v784_v55  ;;  %v740_v51 = vpop.xlane.xlu0 %739  ;;  %v770_v60 = vmul.f32 0.6931472, %v1195_v57  ;;  %v726_v61 = vpop.xlane.xlu2 %725 }
 0x278   : > { %1196 = vlog2.f32 %v740_v51 }
 0x279   : > { %1198 = vlog2.f32 %v726_v61  ;;  %v791_v22 = vsub.f32 %v1681_v35, %v770_v60 }
 0x27b   : > { %v742_v16 = vpop.xlane.xlu1 %741  ;;  %807 = vst [vmem:[%s1744_s13 + $0x50] sm:$0xff] %v791_v22 }
 0x27c   : > { %1200 = vlog2.f32 %v742_v16 }
 0x27e   : > { %v1197_v54 = vpop.eup %1196 }
 0x27f   : > { %v1199_v62 = vpop.eup %1198  ;;  %v772_v1 = vmul.f32 0.6931472, %v1197_v54  ;;  %v728_v4 = vpop.xlane.xlu0 %727 }
 0x280   : > { %v758_v27 = vmul.f32 0.6931472, %v1199_v62  ;;  %1202 = vlog2.f32 %v728_v4 }
 0x281   : > { %v792_v56 = vsub.f32 %v1691_v44, %v772_v1 }
 0x282   : > { %v1201_v6 = vpop.eup %1200  ;;  %v785_v7 = vsub.f32 %v1685_v37, %v758_v27 }
 0x283   : > { %808 = vst [vmem:[%s1744_s13 + $0x58] sm:$0xff] %v792_v56  ;;  %v774_v10 = vmul.f32 0.6931472, %v1201_v6  ;;  %v730_v35 = vpop.xlane.xlu1 %729 }
 0x284   : > { %801 = vst [vmem:[%s1744_s13 + $0x20] sm:$0xff] %v785_v7  ;;  %1204 = vlog2.f32 %v730_v35 }
 0x285   : > { %v793_v11 = vsub.f32 %v1695_v42, %v774_v10 }
 0x286   : > { %v1203_v12 = vpop.eup %1202 }
 0x287   : > { %809 = vst [vmem:[%s1744_s13 + $0x60] sm:$0xff] %v793_v11  ;;  %v760_v59 = vmul.f32 0.6931472, %v1203_v12  ;;  %v732_v15 = vpop.xlane.xlu2 %731 }
 0x288   : > { %1206 = vlog2.f32 %v732_v15 }
 0x289   : > { %v786_v44 = vsub.f32 %v1701_v47, %v760_v59 }
 0x28a   : > { %v1205_v17 = vpop.eup %1204 }
 0x28b   : > { %802 = vst [vmem:[%s1744_s13 + $0x28] sm:$0xff] %v786_v44  ;;  %v762_v37 = vmul.f32 0.6931472, %v1205_v17  ;;  %v746_v19 = vpop.xlane.xlu0 %745 }
 0x28c   : > { %1208 = vlog2.f32 %v746_v19 }
 0x28d   : > { %v787_v63 = vsub.f32 %v1707_v58, %v762_v37 }
 0x28e   : > { %v1207_v21 = vpop.eup %1206 }
 0x28f   : > { %803 = vst [vmem:[%s1744_s13 + $0x30] sm:$0xff] %v787_v63  ;;  %v764_v42 = vmul.f32 0.6931472, %v1207_v21  ;;  %v744_v23 = vpop.xlane.xlu2 %743 }
 0x290   : > { %1210 = vlog2.f32 %v744_v23 }
 0x291   : > { %v788_v0 = vsub.f32 %v1715_v2, %v764_v42 }
 0x292   : > { %v1209_v24 = vpop.eup %1208 }
 0x293   : > { %804 = vst [vmem:[%s1744_s13 + $0x38] sm:$0xff] %v788_v0  ;;  %v778_v47 = vmul.f32 0.6931472, %v1209_v24  ;;  %v748_v25 = vpop.xlane.xlu1 %747 }
 0x294   : > { %1212 = vlog2.f32 %v748_v25 }
 0x295   : > { %v795_v58 = vsub.f32 %v1721_v9, %v778_v47 }
 0x296   : > { %v1211_v26 = vpop.eup %1210 }
 0x297   : > { %811 = vst [vmem:[%s1744_s13 + $0x70] sm:$0xff] %v795_v58  ;;  %v776_v28 = vmul.f32 0.6931472, %v1211_v26 }
 0x299   : > { %v794_v2 = vsub.f32 %v1727_v14, %v776_v28 }
 0x29a   : > { %v1213_v3 = vpop.eup %1212 }
 0x29b   : > { %810 = vst [vmem:[%s1744_s13 + $0x68] sm:$0xff] %v794_v2  ;;  %v780_v29 = vmul.f32 0.6931472, %v1213_v3 }
 0x29d   : > { %v796_v30 = vsub.f32 %v1733_v20, %v780_v29 }
 0x29f   : > { %812 = vst [vmem:[%s1744_s13 + $0x78] sm:$0xff] %v796_v30 }
 0x2a0   : > { %1331 = shalt.err (!%p1328_p10)
}
 0x2a1   : > { %s1380_s8 = smov 128   ;;  %s1381_s12 = smov 8  }
 0x2a2   : > { %1087 = dma.vmem_to_hbm [thread:$0]  (%p1484_p3), %s827_s7, 2048, %s829_s26, %s814_s22, %s1380_s8, %s1380_s8, %s1381_s12  }
 0x2a3 PF: > { %s843_s13 = sand.u32 1, %s1362_s18   ;;  %p1824_p12 = scmp.ge.s32.totalorder %s1374_s21, 2 }
 0x2a4   : > { %s844_s15 = scalar_lea.sflag [#allocation4], %s843_s13 }
 0x2a5   : > { %p1101_p13 = pnand %p1824_p12, %p1447_p6 }
 0x2a7   : > { %p1102_p0 = pneg %p1101_p13 }
 0x2a9   : > { %1357 = dma.done.wait (%p1102_p0), %s844_s15, 2048  }
 0x2aa   : > { %1359 = vsyncadd (%p1102_p0), %s844_s15, 4294965248  ;;  %p19_p5 = scmp.ge.s32.totalorder %s1474_s14, 4   ;;  %s1825_s18 = smov %s1366_s19 }
 0x2ab   : > { %s1826_s19 = smov %s1370_s20  ;;  %s1827_s20 = smov %s1490_s23 }
 0x2ac   : > { %s1828_s21 = smov %s1474_s14  ;;  %21 = sbr.rel (!%p19_p5) target bundleno = 6 (0x6), region = 93 }
 0x2b1   :  { %850 = vsyncpa [#allocation3], 1 }
 0x2b2   :  { %852 = vsyncpa [#allocation3 + $0x1], 1 }
 0x2b3   :  { %853 = vsyncpa [#allocation6], 1 }
 0x2b4   :  { %854 = vsyncpa [#allocation4], 1 }
 0x2b5   :  { %856 = vsyncpa [#allocation4 + $0x1], 1 }

</bundles_post_ra>
